<compile_context>
chip_gen: v7x
topology: tpu7x:2x2x1
jax: 0.10.0
libtpu: 0.0.40
codegen_flags: <defaults>
</compile_context>

<pallas_src>
import functools

import jax
import jax.numpy as jnp
from jax import lax
from jax.experimental import pallas as pl
from jax.experimental.pallas import tpu as pltpu


def _round_up(x, m):
    return (x + m - 1) // m * m


def _rotary_kernel(x_ref, cos_ref, sin_ref, o_ref, *, heads, head_dim):
    # x_ref / o_ref: (tT, H*D) lane-flattened; cos_ref / sin_ref: (tT, D).
    x = x_ref[...].astype(jnp.float32)
    size = heads * head_dim
    half = head_dim // 2

    # Tile the (tT, D) tables across heads once per block; keeps table HBM
    # traffic at (T, D) while the VPU filler is free (kernel is HBM-bound).
    cos = jnp.tile(cos_ref[...], (1, heads))            # (tT, H*D)  [cos,  cos]
    sin = jnp.tile(sin_ref[...], (1, heads))            # (tT, H*D)  [sin, -sin]

    # Per-head half-swap on the flattened lane axis: position p needs its
    # partner at p + half (first half of a head) or p - half (second half).
    fwd = pltpu.roll(x, shift=size - half, axis=1)      # out[p] = x[p + half]
    bwd = pltpu.roll(x, shift=half, axis=1)             # out[p] = x[p - half]
    lane = lax.broadcasted_iota(jnp.int32, x.shape, 1)
    first_half = (lane % head_dim) < half
    x_swap = jnp.where(first_half, fwd, bwd)

    o_ref[...] = (x * cos + x_swap * sin).astype(o_ref.dtype)


@functools.lru_cache(maxsize=16)
def _rotary_tables(T, D, base):
    # Hoisted out of the per-call path (mirrors the torch module's cache).
    inv_freq = (1.0 / base) ** (jnp.arange(0, D, 2, dtype=jnp.float32) / D)
    t = jnp.arange(T, dtype=jnp.float32)
    freqs = jnp.outer(t, inv_freq)                       # (T, D//2)
    cos_h = jnp.cos(freqs)
    sin_h = jnp.sin(freqs)
    cos_full = jnp.concatenate([cos_h, cos_h], axis=-1)      # (T, D)
    sin_signed = jnp.concatenate([sin_h, -sin_h], axis=-1)   # (T, D)
    return cos_full, sin_signed


def _vmem_budget():
    """Generation-aware (target tile bytes, scoped VMEM limit)."""
    try:
        cap = getattr(pltpu.get_tpu_info(), "vmem_capacity_bytes", None)
    except Exception:
        cap = None
    if cap is None or cap <= 64 * 1024 * 1024:
        # v7x-class (64 MiB physical VMEM) or unknown: stay conservative.
        return 2 * 1024 * 1024, 32 * 1024 * 1024
    # v5e / v6e (128 MiB physical VMEM): bigger tiles, fewer grid steps.
    return 4 * 1024 * 1024, 64 * 1024 * 1024


def _choose_seq_tile(T, B, target_bytes, row_bytes_f32):
    tt = max(8, (target_bytes // max(row_bytes_f32, 1)) // 8 * 8)
    if tt >= T:
        tt = T  # full extent is always a legal block dim
    # Guarantee enough grid steps to hide DMA (and feed both v7x TensorCores).
    while (-(-T // tt)) * B < 8 and tt > 8:
        new_tt = max(8, (tt // 2) // 8 * 8)
        if new_tt == tt:
            break
        tt = new_tt
    return tt


def rotary(x, base=10000.0):
    """Apply rotary embedding. x: [B, T, H, D] -> [B, T, H, D] (same dtype)."""
    B, T, H, D = x.shape
    assert D % 2 == 0, "head dim must be even"
    HD = H * D

    cos_full, sin_signed = _rotary_tables(T, D, float(base))

    target_tile_bytes, vmem_limit = _vmem_budget()
    # Size the tile on its f32 working set (in-kernel temporaries are f32).
    row_bytes_f32 = _round_up(HD, 128) * 4
    tT = _choose_seq_tile(T, B, target_tile_bytes, row_bytes_f32)
    num_t = pl.cdiv(T, tT)

    # Contiguous flatten of (H, D) -> lane-dense, unit-stride in/out DMAs.
    x2d = x.reshape(B, T, HD)

    x_spec = pl.BlockSpec((pl.Squeezed(), tT, HD), lambda ti, b: (b, ti, 0))
    tbl_spec = pl.BlockSpec((tT, D), lambda ti, b: (ti, 0))

    kernel = functools.partial(_rotary_kernel, heads=H, head_dim=D)
    itemsize = x.dtype.itemsize
    cost = pl.CostEstimate(
        flops=3 * B * T * HD,
        transcendentals=0,
        bytes_accessed=2 * B * T * HD * itemsize + 2 * T * D * 4,
    )

    out = pl.pallas_call(
        kernel,
        out_shape=jax.ShapeDtypeStruct((B, T, HD), x.dtype),
        # t-tiles outer, batch inner: cos/sin blocks are revisited (not
        # re-fetched) across the inner batch steps.
        grid=(num_t, B),
        in_specs=[x_spec, tbl_spec, tbl_spec],
        out_specs=x_spec,
        input_output_aliases={0: 0},
        cost_estimate=cost,
        compiler_params=pltpu.CompilerParams(
            dimension_semantics=("parallel", "parallel"),
            vmem_limit_bytes=vmem_limit,
        ),
    )(x2d, cos_full, sin_signed)
    return out.reshape(B, T, H, D)


def rotary_ref(x, base=10000.0):
    """Pure-JAX reference mirroring the PyTorch forward."""
    B, T, H, D = x.shape
    inv_freq = (1.0 / base) ** (jnp.arange(0, D, 2, dtype=jnp.float32) / D)
    t = jnp.arange(T, dtype=jnp.float32)
    freqs = jnp.outer(t, inv_freq)
    cos = jnp.cos(freqs)[None, :, None, :]
    sin = jnp.sin(freqs)[None, :, None, :]
    x1, x2 = jnp.split(x.astype(jnp.float32), 2, axis=3)
    y1 = x1 * cos + x2 * sin
    y2 = x1 * -sin + x2 * cos
    return jnp.concatenate([y1, y2], axis=3).astype(x.dtype)


if __name__ == "__main__":
    key = jax.random.PRNGKey(0)
    B, T, H, D = 2, 8, 4, 32
    x = jax.random.normal(key, (B, T, H, D), dtype=jnp.float32)

    y_ref = rotary_ref(x)
    y = jax.block_until_ready(rotary(x))

    assert y.shape == (B, T, H, D) and y.dtype == x.dtype
    assert jnp.allclose(y, y_ref, atol=1e-5, rtol=1e-5)

    print("KERNEL_OK")
</pallas_src>

<mosaic_0001>
module attributes {stable_mosaic.version = 11 : i64} {
  func.func @_rotary_kernel(%arg0: i32, %arg1: i32, %arg2: memref<1x8x128xf32, #tpu.memory_space<vmem>>, %arg3: memref<8x32xf32, #tpu.memory_space<vmem>>, %arg4: memref<8x32xf32, #tpu.memory_space<vmem>>, %arg5: memref<1x8x128xf32, #tpu.memory_space<vmem>>) attributes {dimension_semantics = [#tpu.dimension_semantics<parallel>, #tpu.dimension_semantics<parallel>], iteration_bounds = array<i64: 1, 2>, scalar_prefetch = 0 : i64, scratch_operands = 0 : i64, tpu.core_type = #tpu.core_type<tc>, window_params = [{transform_indices = @transform_0, window_bounds = array<i64: 1, 8, 128>}, {transform_indices = @transform_1, window_bounds = array<i64: 8, 32>}, {transform_indices = @transform_2, window_bounds = array<i64: 8, 32>}, {transform_indices = @transform_3, window_bounds = array<i64: 1, 8, 128>}]} {
    %c0 = arith.constant 0 : index
    %c0_0 = arith.constant 0 : index
    %c0_1 = arith.constant 0 : index
    %0 = vector.load %arg2[%c0, %c0_0, %c0_1] : memref<1x8x128xf32, #tpu.memory_space<vmem>>, vector<1x8x128xf32>
    %1 = vector.shape_cast %0 : vector<1x8x128xf32> to vector<8x128xf32>
    %c0_2 = arith.constant 0 : index
    %c0_3 = arith.constant 0 : index
    %2 = vector.load %arg3[%c0_2, %c0_3] : memref<8x32xf32, #tpu.memory_space<vmem>>, vector<8x32xf32>
    %3 = tpu.concatenate %2, %2, %2, %2 in 1 : vector<8x32xf32>, vector<8x32xf32>, vector<8x32xf32>, vector<8x32xf32> -> vector<8x128xf32>
    %c0_4 = arith.constant 0 : index
    %c0_5 = arith.constant 0 : index
    %4 = vector.load %arg4[%c0_4, %c0_5] : memref<8x32xf32, #tpu.memory_space<vmem>>, vector<8x32xf32>
    %5 = tpu.concatenate %4, %4, %4, %4 in 1 : vector<8x32xf32>, vector<8x32xf32>, vector<8x32xf32>, vector<8x32xf32> -> vector<8x128xf32>
    %c112_i32 = arith.constant 112 : i32
    %6 = tpu.dynamic_rotate %1 by %c112_i32 dim 1 : vector<8x128xf32>, i32 -> vector<8x128xf32>
    %c16_i32 = arith.constant 16 : i32
    %7 = tpu.dynamic_rotate %1 by %c16_i32 dim 1 : vector<8x128xf32>, i32 -> vector<8x128xf32>
    %8 = tpu.iota {dimensions = array<i32: 1>} : vector<8x128xi32>
    %c32_i32 = arith.constant 32 : i32
    %c0_i32 = arith.constant 0 : i32
    %9 = arith.cmpi eq, %c32_i32, %c0_i32 : i32
    %c1_i32 = arith.constant 1 : i32
    %10 = arith.select %9, %c1_i32, %c32_i32 : i32
    %11 = vector.broadcast %10 : i32 to vector<8x128xi32>
    %12 = arith.remsi %8, %11 : vector<8x128xi32>
    %c0_i32_6 = arith.constant 0 : i32
    %13 = vector.broadcast %c0_i32_6 : i32 to vector<8x128xi32>
    %14 = arith.cmpi ne, %12, %13 : vector<8x128xi32>
    %c0_i32_7 = arith.constant 0 : i32
    %15 = vector.broadcast %c0_i32_7 : i32 to vector<8x128xi32>
    %16 = arith.cmpi slt, %12, %15 : vector<8x128xi32>
    %c0_i32_8 = arith.constant 0 : i32
    %17 = arith.cmpi slt, %10, %c0_i32_8 : i32
    %18 = vector.broadcast %17 : i1 to vector<8x128xi1>
    %19 = vector.broadcast %18 : vector<8x128xi1> to vector<8x128xi1>
    %20 = arith.xori %16, %19 : vector<8x128xi1>
    %21 = arith.andi %20, %14 : vector<8x128xi1>
    %22 = vector.broadcast %10 : i32 to vector<8x128xi32>
    %23 = arith.addi %12, %22 : vector<8x128xi32>
    %24 = arith.select %21, %23, %12 : vector<8x128xi1>, vector<8x128xi32>
    %c16_i32_9 = arith.constant 16 : i32
    %25 = vector.broadcast %c16_i32_9 : i32 to vector<8x128xi32>
    %26 = arith.cmpi slt, %24, %25 : vector<8x128xi32>
    %27 = arith.select %26, %6, %7 : vector<8x128xi1>, vector<8x128xf32>
    %28 = arith.mulf %1, %3 : vector<8x128xf32>
    %29 = arith.mulf %27, %5 : vector<8x128xf32>
    %30 = arith.addf %28, %29 : vector<8x128xf32>
    %c0_10 = arith.constant 0 : index
    %c0_11 = arith.constant 0 : index
    %c0_12 = arith.constant 0 : index
    %31 = vector.load %arg5[%c0_10, %c0_11, %c0_12] : memref<1x8x128xf32, #tpu.memory_space<vmem>>, vector<1x8x128xf32>
    %32 = vector.shape_cast %31 : vector<1x8x128xf32> to vector<8x128xf32>
    %33 = vector.shape_cast %30 : vector<8x128xf32> to vector<1x8x128xf32>
    tpu.vector_store %arg5[%c0_10, %c0_11, %c0_12], %33 {strides = array<i32>} : memref<1x8x128xf32, #tpu.memory_space<vmem>>, vector<1x8x128xf32>,
    return
  }
  func.func @transform_0(%arg0: i32, %arg1: i32) -> (i32, i32, i32) {
    %c0_i32 = arith.constant 0 : i32
    %c0_i32_0 = arith.constant 0 : i32
    return %arg1, %arg0, %c0_i32 : i32, i32, i32
  }
  func.func @transform_1(%arg0: i32, %arg1: i32) -> (i32, i32) {
    %c0_i32 = arith.constant 0 : i32
    %c0_i32_0 = arith.constant 0 : i32
    return %arg0, %c0_i32 : i32, i32
  }
  func.func @transform_2(%arg0: i32, %arg1: i32) -> (i32, i32) {
    %c0_i32 = arith.constant 0 : i32
    %c0_i32_0 = arith.constant 0 : i32
    return %arg0, %c0_i32 : i32, i32
  }
  func.func @transform_3(%arg0: i32, %arg1: i32) -> (i32, i32, i32) {
    %c0_i32 = arith.constant 0 : i32
    %c0_i32_0 = arith.constant 0 : i32
    return %arg1, %arg0, %c0_i32 : i32, i32, i32
  }
}

</mosaic_0001>

<bundles_post_ra>
// kernel: tpu_custom_call.1
= control target key start
LH: loop header
LB: loop body
LE: loop exit
PB: predicated region body
PF: predicated region fallthrough
CT: control target
= control target key end

     0   :  { %8 = vsyncpa [#allocation3], 0  ;;  %s823_s0 = inlined_call_operand.hbm [shape: f32[2,8,128], index: 0, kind: input, shape index: {}, may-alias: {0,3}]   ;;  %s824_s1 = inlined_call_operand.vmem [shape: f32[8,32], index: 1, kind: input, shape index: {}]   ;;  %s825_s2 = inlined_call_operand.vmem [shape: f32[8,32], index: 2, kind: input, shape index: {}]   ;;  %s826_s3 = inlined_call_operand.hbm [shape: f32[2,8,128], index: 3, kind: output, shape index: {}, may-alias: {0,3}]  }
   0x1   :  { %10 = vsyncpa [#allocation3 + $0x1], 0 }
   0x2   :  { %11 = vsyncpa [#allocation4], 0 }
   0x3   :  { %13 = vsyncpa [#allocation4 + $0x1], 0  ;;  %s641_s12 = smov 0   ;;  %s643_s13 = smov 0  }
   0x4   :  { %s645_s14 = smov 0   ;;  %s647_s15 = smov 0  }
   0x5   :  { %s649_s16 = smov 0   ;;  %s651_s17 = smov 0  }
   0x6 LB: > { %s418_s18 = sadd.s32 4294967295, %s612_s17   ;;  %s419_s19 = sadd.s32 4294967294, %s612_s17   ;;  %s612_s17 = sphi %s651_s17, %s19_s17   ;;  %s608_s16 = sphi %s649_s16, %s842_s16   ;;  %s604_s15 = sphi %s647_s15, %s841_s15   ;;  %s600_s14 = sphi %s645_s14, %s840_s14   ;;  %s596_s13 = sphi %s643_s13, %s839_s13   ;;  %s592_s12 = sphi %s641_s12, %s838_s12  }
   0x7   : > { %s28_s20 = sadd.s32 1, %s608_s16  ;;  %s40_s21 = sadd.s32 1, %s600_s14 }
   0x8   : > { %p29_p0 = scmp.ge.s32.totalorder %s28_s20, 2  ;;  %p47_p1 = scmp.ne.s32.totalorder %s600_s14, %s596_s13 }
   0x9   : > { %p48_p2 = scmp.eq.s32.totalorder %s612_s17, 0  ;;  %p53_p3 = scmp.ne.s32.totalorder %s596_s13, %s592_s12 }
   0xa   : > { %s844_s20 = smov (%p29_p0, %s28_s20), 0  ;;  %p54_p5 = scmp.eq.s32.totalorder %s418_s18, 0 }
   0xb   : > { %p682_p4 = por %p48_p2, %p47_p1  ;;  %s35_s23 = ssub.s32 %s608_s16, %s844_s20 }
   0xc   : > { %p131_p6 = scmp.eq.s32.totalorder %s418_s18, 1  ;;  %p38_p7 = scmp.eq.s32.totalorder %s35_s23, 0 }
   0xd   : > { %p688_p8 = por %p54_p5, %p53_p3  ;;  %p137_p10 = scmp.eq.s32.totalorder %s419_s19, 1 }
   0xe   : > { %p692_p9 = por %p131_p6, %p47_p1  ;;  %p445_p13 = scmp.lt.s32.totalorder %s612_s17, 2 }
   0xf   : > { %s697_s26 = scalar_select %p38_p7, %s600_s14, %s40_s21  }
  0x10   : > { %s830_s25 = scalar_select %p692_p9, 1, 0 }
  0x11   : > { %p699_p11 = por %p137_p10, %p53_p3  ;;  %s171_s28 = sand.u32 1, %s600_s14  }
  0x12   : > { %s424_s29 = sshll.u32 %s171_s28, 3  ;;  %s425_s30 = sshll.u32 %s608_s16, 7 }
  0x13   : > { %s831_s27 = scalar_select %p699_p11, 1, 0 }
  0x14   : > { %s710_s6 = scalar_lea.hbm %s823_s0, %s425_s30  ;;  %s175_s7 = scalar_lea.vmem [#allocation2], %s424_s29 }
  0x15   : > { %s183_s8 = sshll.u32 %s175_s7, 4  ;;  %p716_p0 = pnand %p445_p13, %p682_p4  ;;  %s712_s8 = int_to_ptr.vmem [resolvable:$true] %s183_s8 }
  0x16   : > { %s172_s10 = scalar_lea.sflag [#allocation3], %s171_s28  ;;  %s500_s11 = scalar_lea.hbm %s710_s6, 128 }
  0x17   : > { %p501_p3 = scmp.ne.s32.totalorder %s710_s6, %s500_s11  ;;  %p502_p5 = pneg %p716_p0 }
  0x18   : > { %s505_s21 = scalar_lea.hbm %s823_s0, 256  ;;  %p506_p4 = scmp.lt.u32.totalorder %s710_s6, %s823_s0 }
  0x19   : > { %p503_p6 = pnand %p502_p5, %p501_p3  ;;  %p507_p10 = scmp.lt.u32.totalorder %s505_s21, %s500_s11 }
  0x1a   : > { %p509_p12 = scmp.lt.u32.totalorder %s500_s11, %s710_s6 }
  0x1b   : > { %p504_p7 = pneg %p503_p6  ;;  %p508_p13 = por %p507_p10, %p506_p4 }
  0x1d   : > { %p510_p1 = por %p509_p12, %p508_p13 }
  0x1f   : > { %p511_p2 = pnand %p510_p1, %p504_p7 }
  0x21   : > { %514 = shalt.err (!%p511_p2)
}
  0x22   : > { %s515_s28 = scalar_lea.vmem %s712_s8, 128  ;;  %s614_s29 = smov [#allocation2]  }
  0x23   : > { %p516_p3 = scmp.ne.s32.totalorder %s712_s8, %s515_s28  ;;  %s520_s30 = sshll.u32 %s614_s29, 4  ;;  %s521_s30 = int_to_ptr.vmem [resolvable:$false] %s520_s30 }
  0x24   : > { %s522_s4 = scalar_lea.vmem %s521_s30, 256  ;;  %p523_p9 = scmp.lt.s32.totalorder %s712_s8, %s521_s30 }
  0x25   : > { %p518_p6 = pnand %p516_p3, %p502_p5  ;;  %p524_p4 = scmp.lt.s32.totalorder %s522_s4, %s515_s28 }
  0x27   : > { %p519_p11 = pneg %p518_p6  ;;  %p525_p10 = por %p524_p4, %p523_p9 }
  0x29   : > { %p526_p12 = pnand %p525_p10, %p519_p11 }
  0x2b   : > { %529 = shalt.err (!%p526_p12)
}
  0x2c   : > { %440 = dma.hbm_to_vmem [thread:$0]  (!%p716_p0), %s710_s6, 128, %s712_s8, %s172_s10  }
  0x2d   : > { %p833_p1 = scmp.lt.s32.totalorder %s612_s17, 3  ;;  %p834_p2 = scmp.ge.s32.totalorder %s612_s17, 1 }
  0x2f   : > { %p189_p5 = pnand %p834_p2, %p833_p1 }
  0x30   : > { %s752_s5 = sand.u32 (!%p189_p5), 1, %s596_s13  }
  0x31   : > { %192 = sbr.rel (%p189_p5) target bundleno = 204 (0xcc), region = 32  ;;  %s427_s7 = sshll.u32 (!%p189_p5), %s752_s5, 3 }
  0x32   : > { %s195_s11 = scalar_lea.sflag (!%p189_p5), [#allocation3], %s752_s5  ;;  %s198_s9 = scalar_lea.vmem (!%p189_p5), [#allocation2], %s427_s7 }
  0x38   : > { %583 = dma.done.wait (%p688_p8), %s195_s11, 128  }
  0x39   : > { %585 = vsyncadd (%p688_p8), %s195_s11, 4294967168  ;;  %v238_v0 = vld [vmem:[%s824_s1] sm:$0xff]  ;;  %s615_s10 = smov 64   ;;  %s616_s18 = smov 32   ;;  %v273_v3 = vlaneseq  ;;  %vm249_vm0 = vcmask 261120   ;;  %vm251_vm1 = vcmask 523264  }
  0x3a   : > { %243 = vrot.lane.b32.xlu1 %v238_v0, %s615_s10  ;;  %240 = vrot.lane.b32.xlu0 %v238_v0, %s616_s18  ;;  %v255_v1 = vld [vmem:[%s825_s2] sm:$0xff]  ;;  %s617_s22 = smov 96   ;;  %s618_s24 = smov 16   ;;  %vm253_vm2 = vcmask 785408  }
  0x3b   : > { %v237_v2 = vld [vmem:[%s198_s9] sm:$0xff]  ;;  %s619_s23 = smov 112   ;;  %v274_v6 = vand.u32 127, %v273_v3  ;;  %s430_s28 = sshll.u32 %s604_s15, 7 }
  0x3c   : > { %s228_s29 = scalar_lea.vmem [#allocation5], %s427_s7  ;;  %s774_s9 = scalar_lea.hbm %s826_s3, %s430_s28 }
  0x3d   : > { %v279_v9 = vand.u32 31, %v274_v6  ;;  %s308_s30 = sshll.u32 %s228_s29, 4  ;;  %s294_s6 = scalar_lea.sflag [#allocation4], %s752_s5  ;;  %s776_s30 = int_to_ptr.vmem [resolvable:$true] %s308_s30 }
  0x3e   : > { %260 = vrot.lane.b32.xlu1 %v255_v1, %s615_s10  ;;  %257 = vrot.lane.b32.xlu0 %v255_v1, %s616_s18  ;;  %s530_s8 = scalar_lea.vmem %s776_s30, 128  ;;  %p835_p9 = scmp.ne.s32.totalorder %s830_s25, 0 }
  0x3f   : > { %vm287_vm3 = vcmp.lt.s32.totalorder %v279_v9, 16  ;;  %p531_p8 = scmp.ne.s32.totalorder %s776_s30, %s530_s8  ;;  %s620_s15 = smov [#allocation5]  }
  0x40   : > { %s534_s7 = sshll.u32 %s620_s15, 4  ;;  %s535_s7 = int_to_ptr.vmem [resolvable:$false] %s534_s7 }
  0x41   : > { %p532_p11 = pnand %p531_p8, %p835_p9  ;;  %s536_s10 = scalar_lea.vmem %s535_s7, 256 }
  0x42   : > { %263 = vrot.lane.b32.xlu1 %v255_v1, %s617_s22  ;;  %246 = vrot.lane.b32.xlu0 %v238_v0, %s617_s22  ;;  %p537_p7 = scmp.lt.s32.totalorder %s776_s30, %s535_s7  ;;  %p538_p13 = scmp.lt.s32.totalorder %s536_s10, %s530_s8 }
  0x43   : > { %p533_p0 = pneg %p532_p11 }
  0x44   : > { %p539_p3 = por %p538_p13, %p537_p7 }
  0x46   : > { %271 = vrot.lane.b32.xlu1 %v237_v2, %s618_s24  ;;  %269 = vrot.lane.b32.xlu0 %v237_v2, %s619_s23  ;;  %p540_p6 = pnand %p539_p3, %p533_p0 }
  0xac   : > { %v244_v4 = vpop.permute.xlu1 %243  ;;  %v241_v5 = vpop.permute.xlu0 %240 }
  0xad   : > { %v250_v10 = vsel %vm249_vm0, %v238_v0, %v241_v5 }
  0xae   : > { %v252_v14 = vsel %vm251_vm1, %v250_v10, %v244_v4 }
  0xb0   : > { %v261_v7 = vpop.permute.xlu1 %260  ;;  %v258_v8 = vpop.permute.xlu0 %257 }
  0xb1   : > { %v266_v13 = vsel %vm249_vm0, %v255_v1, %v258_v8 }
  0xb2   : > { %v267_v16 = vsel %vm251_vm1, %v266_v13, %v261_v7 }
  0xb4   : > { %v264_v11 = vpop.permute.xlu1 %263  ;;  %v247_v12 = vpop.permute.xlu0 %246 }
  0xb5   : > { %v254_v15 = vsel %vm253_vm2, %v252_v14, %v247_v12  ;;  %v268_v19 = vsel %vm253_vm2, %v267_v16, %v264_v11 }
  0xb6   : > { %v289_v21 = vmul.f32 %v254_v15, %v237_v2 }
  0xb8   : > { %v272_v17 = vpop.permute.xlu1 %271  ;;  %v270_v18 = vpop.permute.xlu0 %269 }
  0xb9   : > { %v288_v20 = vsel %vm287_vm3, %v270_v18, %v272_v17 }
  0xba   : > { %v290_v22 = vmul.f32 %v288_v20, %v268_v19 }
  0xbc   : > { %v291_v23 = vadd.f32 %v290_v22, %v289_v21 }
  0xbe   : > { %292 = vst [vmem:[%s228_s29] sm:$0xff] %v291_v23 }
  0xbf   : > { %543 = shalt.err (!%p540_p6)
}
  0xc0   : > { %s544_s5 = scalar_lea.hbm %s774_s9, 128  ;;  %s548_s21 = scalar_lea.hbm %s826_s3, 256 }
  0xc1   : > { %p545_p4 = scmp.ne.s32.totalorder %s774_s9, %s544_s5  ;;  %p549_p1 = scmp.lt.u32.totalorder %s774_s9, %s826_s3 }
  0xc2   : > { %p550_p2 = scmp.lt.u32.totalorder %s548_s21, %s544_s5  ;;  %p552_p8 = scmp.lt.u32.totalorder %s544_s5, %s774_s9 }
  0xc3   : > { %p546_p10 = pnand %p545_p4, %p835_p9 }
  0xc4   : > { %p551_p5 = por %p550_p2, %p549_p1 }
  0xc5   : > { %p547_p12 = pneg %p546_p10 }
  0xc6   : > { %p553_p11 = por %p552_p8, %p551_p5 }
  0xc8   : > { %p554_p0 = pnand %p553_p11, %p547_p12 }
  0xca   : > { %557 = shalt.err (!%p554_p0)
}
  0xcb   : > { %435 = dma.vmem_to_hbm [thread:$0]  (%p835_p9), %s776_s30, 128, %s774_s9, %s294_s6  }
  0xcc PF: > { %s320_s23 = sand.u32 1, %s592_s12   ;;  %p836_p7 = scmp.ne.s32.totalorder %s831_s27, 0 }
  0xcd   : > { %p837_p13 = scmp.ge.s32.totalorder %s612_s17, 2  ;;  %s321_s28 = scalar_lea.sflag [#allocation4], %s320_s23 }
  0xcf   : > { %p442_p3 = pnand %p837_p13, %p836_p7 }
  0xd1   : > { %587 = dma.done.wait (!%p442_p3), %s321_s28, 128  }
  0xd2   : > { %589 = vsyncadd (!%p442_p3), %s321_s28, 4294967168  ;;  %s19_s17 = sadd.s32 1, %s612_s17   ;;  %s838_s12 = smov %s596_s13 }
  0xd3   : > { %p16_p6 = scmp.ge.s32.totalorder %s19_s17, 4   ;;  %s839_s13 = smov %s600_s14 }
  0xd4   : > { %s840_s14 = smov %s697_s26  ;;  %s841_s15 = smov %s608_s16 }
  0xd5   : > { %s842_s16 = smov %s844_s20  ;;  %18 = sbr.rel (!%p16_p6) target bundleno = 6 (0x6), region = 83 }
  0xdc   :  { %326 = vsyncpa [#allocation3], 1 }
  0xdd   :  { %328 = vsyncpa [#allocation3 + $0x1], 1 }
  0xde   :  { %329 = vsyncpa [#allocation4], 1 }
  0xdf   :  { %331 = vsyncpa [#allocation4 + $0x1], 1 }

</bundles_post_ra>
